<compile_context>
chip_gen: v6e
topology: v6e:2x2x1
jax: 0.10.0
libtpu: 0.0.40
codegen_flags: <defaults>
</compile_context>

<pallas_src>
import functools

import jax
import jax.numpy as jnp
from jax.experimental import pallas as pl
from jax.experimental.pallas import tpu as pltpu


def _round_up(x, m):
    return ((x + m - 1) // m) * m


def _mlp_kernel(x_ref, w1_ref, shift_ref, w2_ref, b2_ref, logits_ref, probas_ref):
    # x streamed as f32 from HBM; cast to bf16 in-kernel (free on the VPU here).
    x = x_ref[...].astype(w1_ref.dtype)                            # (TB, F) bf16

    # Linear(F -> H): BN scale pre-folded into w1, (b1*scale + BN shift) pre-folded
    # into `shift`. Dropout(p=0) is identity and folded away.
    h = jnp.dot(x, w1_ref[...], preferred_element_type=jnp.float32)
    h = jnp.maximum(h + shift_ref[...], 0.0)                       # (TB, H) f32

    # Linear(H -> O)
    logits = jnp.dot(h.astype(w2_ref.dtype), w2_ref[...],
                     preferred_element_type=jnp.float32)
    logits = logits + b2_ref[...]                                  # (TB, O) f32

    logits_ref[...] = logits
    probas_ref[...] = jax.nn.sigmoid(logits)


def fold_params(w1, b1, bn_scale, bn_shift, w2, b2, compute_dtype=jnp.bfloat16):
    """Fold eval-mode BatchNorm + first bias into the weights; cast matmul weights."""
    w1_f = (w1 * bn_scale).astype(compute_dtype)                   # (F, H)
    shift = (b1 * bn_scale + bn_shift).astype(jnp.float32)         # (1, H)
    return w1_f, shift, w2.astype(compute_dtype), b2.astype(jnp.float32)


@functools.partial(jax.jit, static_argnames=("block_b",))
def predictor_forward(x, folded_params, *, block_b=4096):
    """x: (B, F) float32. Returns (logits, probas), each (B, n_tasks - 1) float32."""
    w1, shift, w2, b2 = folded_params
    B, F = x.shape
    H = w1.shape[1]
    O = w2.shape[1]

    # Batch tile: large enough to amortize per-grid-step overhead, but keep at
    # least 2 grid steps when B allows (so v7x can shard the batch across its
    # two TensorCores). The ragged last block is handled by Pallas (no padding).
    tb = max(8, min(block_b, _round_up(pl.cdiv(B, 2), 8)))
    grid = (pl.cdiv(B, tb),)

    logits, probas = pl.pallas_call(
        _mlp_kernel,
        out_shape=(jax.ShapeDtypeStruct((B, O), jnp.float32),
                   jax.ShapeDtypeStruct((B, O), jnp.float32)),
        grid=grid,
        in_specs=[
            pl.BlockSpec((tb, F), lambda i: (i, 0)),   # x: streamed (f32) over batch
            pl.BlockSpec((F, H), lambda i: (0, 0)),    # w1 (BN-folded): VMEM-resident
            pl.BlockSpec((1, H), lambda i: (0, 0)),    # fused bias/shift
            pl.BlockSpec((H, O), lambda i: (0, 0)),    # w2
            pl.BlockSpec((1, O), lambda i: (0, 0)),    # b2
        ],
        out_specs=(pl.BlockSpec((tb, O), lambda i: (i, 0)),
                   pl.BlockSpec((tb, O), lambda i: (i, 0))),
        compiler_params=pltpu.CompilerParams(
            dimension_semantics=("parallel",),          # megacore-shard the batch axis
            vmem_limit_bytes=48 * 1024 * 1024),         # big tiles on v5e; < v7x 64 MiB
    )(x, w1, shift, w2, b2)

    return logits, probas


def init_raw_params(key, global_feats, hidden, n_out):
    """Deterministic synthetic parameters (PyTorch-ish uniform init), unfolded."""
    k1, k2, k3, k4, k5, k6, k7, k8 = jax.random.split(key, 8)
    lim1 = 1.0 / jnp.sqrt(global_feats)
    lim2 = 1.0 / jnp.sqrt(hidden)

    # Linear weights stored as (in, out) == transpose of PyTorch's (out, in).
    w1 = jax.random.uniform(k1, (global_feats, hidden), jnp.float32, -lim1, lim1)
    b1 = jax.random.uniform(k2, (1, hidden), jnp.float32, -lim1, lim1)
    w2 = jax.random.uniform(k3, (hidden, n_out), jnp.float32, -lim2, lim2)
    b2 = jax.random.uniform(k4, (1, n_out), jnp.float32, -lim2, lim2)

    # BatchNorm1d (eval mode): fold gamma/beta/running stats into scale/shift.
    gamma = 1.0 + 0.1 * jax.random.normal(k5, (1, hidden), jnp.float32)
    beta = 0.1 * jax.random.normal(k6, (1, hidden), jnp.float32)
    running_mean = 0.05 * jax.random.normal(k7, (1, hidden), jnp.float32)
    running_var = 1.0 + 0.1 * jax.random.uniform(k8, (1, hidden), jnp.float32)
    eps = 1e-5
    bn_scale = gamma / jnp.sqrt(running_var + eps)
    bn_shift = beta - running_mean * bn_scale

    return (w1, b1, bn_scale, bn_shift, w2, b2)


def _reference(x, folded_params):
    """Pure-JAX reference using the same folded / bf16-cast parameters."""
    w1, shift, w2, b2 = folded_params
    xb = x.astype(w1.dtype).astype(jnp.float32)
    h = jnp.maximum(xb @ w1.astype(jnp.float32) + shift, 0.0)
    logits = h.astype(w2.dtype).astype(jnp.float32) @ w2.astype(jnp.float32) + b2
    return logits, jax.nn.sigmoid(logits)


if __name__ == "__main__":
    # Small shapes consistent with the module's forward: (batch, global_feats).
    GLOBAL_FEATS = 32
    HIDDEN = 32
    N_TASKS = 3                       # -> output dim n_tasks - 1 = 2

    key = jax.random.PRNGKey(0)
    kx, kx2, kp = jax.random.split(key, 3)
    raw = init_raw_params(kp, GLOBAL_FEATS, HIDDEN, N_TASKS - 1)
    params = fold_params(*raw)

    # --- Small batch (single grid step) -------------------------------------
    x_small = jax.random.normal(kx, (8, GLOBAL_FEATS), jnp.float32)
    logits, probas = predictor_forward(x_small, params)
    jax.block_until_ready((logits, probas))
    logits_ref, probas_ref = _reference(x_small, params)
    assert logits.shape == (8, N_TASKS - 1)
    assert jnp.allclose(logits, logits_ref, atol=2e-4, rtol=2e-4)
    assert jnp.allclose(probas, probas_ref, atol=2e-4, rtol=2e-4)

    # --- Larger, non-multiple batch (exercises ragged last block + grid) -----
    x_big = jax.random.normal(kx2, (300, GLOBAL_FEATS), jnp.float32)
    logits_b, probas_b = predictor_forward(x_big, params)
    jax.block_until_ready((logits_b, probas_b))
    logits_bref, probas_bref = _reference(x_big, params)
    assert logits_b.shape == (300, N_TASKS - 1)
    assert jnp.allclose(logits_b, logits_bref, atol=2e-4, rtol=2e-4)
    assert jnp.allclose(probas_b, probas_bref, atol=2e-4, rtol=2e-4)

    print("KERNEL_OK")
</pallas_src>

<mosaic_0001>
module attributes {stable_mosaic.version = 11 : i64} {
  func.func @_mlp_kernel(%arg0: i32, %arg1: memref<8x32xf32, #tpu.memory_space<vmem>>, %arg2: memref<32x32xbf16, #tpu.memory_space<vmem>>, %arg3: memref<1x32xf32, #tpu.memory_space<vmem>>, %arg4: memref<32x2xbf16, #tpu.memory_space<vmem>>, %arg5: memref<1x2xf32, #tpu.memory_space<vmem>>, %arg6: memref<8x2xf32, #tpu.memory_space<vmem>>, %arg7: memref<8x2xf32, #tpu.memory_space<vmem>>) attributes {dimension_semantics = [#tpu.dimension_semantics<parallel>], iteration_bounds = array<i64: 1>, scalar_prefetch = 0 : i64, scratch_operands = 0 : i64, tpu.core_type = #tpu.core_type<tc>, window_params = [{transform_indices = @transform_0, window_bounds = array<i64: 8, 32>}, {pipeline_mode = #tpu.pipeline_mode<synchronous>, transform_indices = @transform_1, window_bounds = array<i64: 32, 32>}, {pipeline_mode = #tpu.pipeline_mode<synchronous>, transform_indices = @transform_2, window_bounds = array<i64: 1, 32>}, {pipeline_mode = #tpu.pipeline_mode<synchronous>, transform_indices = @transform_3, window_bounds = array<i64: 32, 2>}, {pipeline_mode = #tpu.pipeline_mode<synchronous>, transform_indices = @transform_4, window_bounds = array<i64: 1, 2>}, {transform_indices = @transform_5, window_bounds = array<i64: 8, 2>}, {transform_indices = @transform_6, window_bounds = array<i64: 8, 2>}]} {
    %c0 = arith.constant 0 : index
    %c0_0 = arith.constant 0 : index
    %0 = vector.load %arg1[%c0, %c0_0] : memref<8x32xf32, #tpu.memory_space<vmem>>, vector<8x32xf32>
    %1 = arith.truncf %0 : vector<8x32xf32> to vector<8x32xbf16>
    %c0_1 = arith.constant 0 : index
    %c0_2 = arith.constant 0 : index
    %2 = vector.load %arg2[%c0_1, %c0_2] : memref<32x32xbf16, #tpu.memory_space<vmem>>, vector<32x32xbf16>
    %cst = arith.constant dense<0.000000e+00> : vector<8x32xf32>
    %3 = tpu.matmul %1, %2, %cst {dimension_numbers = #tpu.dot_dimension_numbers<[1], [0], [0], [1], [0, 0, 1, 1], [], []>} : vector<8x32xbf16>, vector<32x32xbf16>, vector<8x32xf32> -> vector<8x32xf32>
    %c0_3 = arith.constant 0 : index
    %c0_4 = arith.constant 0 : index
    %4 = vector.load %arg3[%c0_3, %c0_4] : memref<1x32xf32, #tpu.memory_space<vmem>>, vector<1x32xf32>
    %5 = vector.broadcast %4 : vector<1x32xf32> to vector<8x32xf32>
    %6 = arith.addf %3, %5 : vector<8x32xf32>
    %cst_5 = arith.constant 0.000000e+00 : f32
    %7 = vector.broadcast %cst_5 : f32 to vector<8x32xf32>
    %8 = arith.maximumf %6, %7 : vector<8x32xf32>
    %9 = arith.truncf %8 : vector<8x32xf32> to vector<8x32xbf16>
    %c0_6 = arith.constant 0 : index
    %c0_7 = arith.constant 0 : index
    %10 = vector.load %arg4[%c0_6, %c0_7] : memref<32x2xbf16, #tpu.memory_space<vmem>>, vector<32x2xbf16>
    %cst_8 = arith.constant dense<0.000000e+00> : vector<8x2xf32>
    %11 = tpu.matmul %9, %10, %cst_8 {dimension_numbers = #tpu.dot_dimension_numbers<[1], [0], [0], [1], [0, 0, 1, 1], [], []>} : vector<8x32xbf16>, vector<32x2xbf16>, vector<8x2xf32> -> vector<8x2xf32>
    %c0_9 = arith.constant 0 : index
    %c0_10 = arith.constant 0 : index
    %12 = vector.load %arg5[%c0_9, %c0_10] : memref<1x2xf32, #tpu.memory_space<vmem>>, vector<1x2xf32>
    %13 = vector.broadcast %12 : vector<1x2xf32> to vector<8x2xf32>
    %14 = arith.addf %11, %13 : vector<8x2xf32>
    %c0_11 = arith.constant 0 : index
    %c0_12 = arith.constant 0 : index
    %15 = vector.load %arg6[%c0_11, %c0_12] : memref<8x2xf32, #tpu.memory_space<vmem>>, vector<8x2xf32>
    tpu.vector_store %arg6[%c0_11, %c0_12], %14 {strides = array<i32>} : memref<8x2xf32, #tpu.memory_space<vmem>>, vector<8x2xf32>,
    %16 = arith.negf %14 : vector<8x2xf32>
    %17 = math.exp %16 : vector<8x2xf32>
    %cst_13 = arith.constant 1.000000e+00 : f32
    %18 = vector.broadcast %cst_13 : f32 to vector<8x2xf32>
    %19 = arith.addf %18, %17 : vector<8x2xf32>
    %20 = arith.divf %18, %19 : vector<8x2xf32>
    %c0_14 = arith.constant 0 : index
    %c0_15 = arith.constant 0 : index
    %21 = vector.load %arg7[%c0_14, %c0_15] : memref<8x2xf32, #tpu.memory_space<vmem>>, vector<8x2xf32>
    tpu.vector_store %arg7[%c0_14, %c0_15], %20 {strides = array<i32>} : memref<8x2xf32, #tpu.memory_space<vmem>>, vector<8x2xf32>,
    return
  }
  func.func @transform_0(%arg0: i32) -> (i32, i32) {
    %c0_i32 = arith.constant 0 : i32
    %c0_i32_0 = arith.constant 0 : i32
    return %arg0, %c0_i32 : i32, i32
  }
  func.func @transform_1(%arg0: i32) -> (i32, i32) {
    %c0_i32 = arith.constant 0 : i32
    %c0_i32_0 = arith.constant 0 : i32
    %c0_i32_1 = arith.constant 0 : i32
    return %c0_i32, %c0_i32_0 : i32, i32
  }
  func.func @transform_2(%arg0: i32) -> (i32, i32) {
    %c0_i32 = arith.constant 0 : i32
    %c0_i32_0 = arith.constant 0 : i32
    %c0_i32_1 = arith.constant 0 : i32
    return %c0_i32, %c0_i32_0 : i32, i32
  }
  func.func @transform_3(%arg0: i32) -> (i32, i32) {
    %c0_i32 = arith.constant 0 : i32
    %c0_i32_0 = arith.constant 0 : i32
    %c0_i32_1 = arith.constant 0 : i32
    return %c0_i32, %c0_i32_0 : i32, i32
  }
  func.func @transform_4(%arg0: i32) -> (i32, i32) {
    %c0_i32 = arith.constant 0 : i32
    %c0_i32_0 = arith.constant 0 : i32
    %c0_i32_1 = arith.constant 0 : i32
    return %c0_i32, %c0_i32_0 : i32, i32
  }
  func.func @transform_5(%arg0: i32) -> (i32, i32) {
    %c0_i32 = arith.constant 0 : i32
    %c0_i32_0 = arith.constant 0 : i32
    return %arg0, %c0_i32 : i32, i32
  }
  func.func @transform_6(%arg0: i32) -> (i32, i32) {
    %c0_i32 = arith.constant 0 : i32
    %c0_i32_0 = arith.constant 0 : i32
    return %arg0, %c0_i32 : i32, i32
  }
}

</mosaic_0001>

<bundles_post_ra>
// kernel: predictor_forward.1
= control target key start
LH: loop header
LB: loop body
LE: loop exit
PB: predicated region body
PF: predicated region fallthrough
CT: control target
= control target key end

     0   :  { %12 = vsyncpa [#allocation3], 0  ;;  %s254_s21 = smov [#allocation2]   ;;  %s319_s0 = inlined_call_operand.hbm [shape: f32[8,32], index: 0, kind: input, shape index: {}]   ;;  %s320_s1 = inlined_call_operand.vmem [shape: bf16[32,32], index: 1, kind: input, shape index: {}]   ;;  %s321_s2 = inlined_call_operand.vmem [shape: f32[1,32], index: 2, kind: input, shape index: {}]   ;;  %s322_s3 = inlined_call_operand.vmem [shape: bf16[32,2], index: 3, kind: input, shape index: {}]   ;;  %s323_s4 = inlined_call_operand.vmem [shape: f32[1,2], index: 4, kind: input, shape index: {}]   ;;  %s324_s5 = inlined_call_operand.vmem [shape: f32[8,2], index: 5, kind: output, shape index: {0}]   ;;  %s325_s6 = inlined_call_operand.vmem [shape: f32[8,2], index: 6, kind: output, shape index: {1}]  }
   0x1   :  { %s19_s22 = sshll.u32 %s254_s21, 4  ;;  %s20_s22 = int_to_ptr.vmem [resolvable:$true] %s19_s22 }
   0x2   :  { %s240_s23 = scalar_lea.vmem %s20_s22, 128  ;;  %p245_p1 = scmp.lt.s32.totalorder %s20_s22, %s20_s22 }
   0x3   :  { %p241_p0 = scmp.ne.s32.totalorder %s20_s22, %s240_s23  ;;  %p246_p2 = scmp.lt.s32.totalorder %s240_s23, %s240_s23 }
   0x5   :  { %p247_p3 = por %p246_p2, %p245_p1 }
   0x7   :  { %p248_p4 = pnand %p247_p3, %p241_p0 }
   0x9   :  { %251 = shalt.err (!%p248_p4)
}
   0xa   :  { %22 = dma.hbm_to_vmem [thread:$0]  %s319_s0, 128, %s20_s22, [#allocation3]  }
   0xb   :  { %252 = dma.done.wait [#allocation3], 128  }
   0xc   :  { %253 = vsyncadd [#allocation3], 4294967168  ;;  %v255_v0 = vmov 0.0   ;;  %vm256_vm0 = vmmov 0   ;;  %v224_v1 = vld [vmem:[%s320_s1 + $0x8] sm:$0xff]   ;;  %v225_v2 = vld [vmem:[%s320_s1] sm:$0xff]  }
   0xd   :  { %205 = vmatprep.subr.bf16.mxu0 %v255_v0  ;;  %209 = vmatprep.mubr.msk.bf16.mxu0 %vm256_vm0, %v255_v0  ;;  %v35_v3 = vld [vmem:[#allocation2] sm:$0xff]  ;;  %vm60_vm1 = vcmask 261120   ;;  %v226_v5 = vld [vmem:[%s322_s3 + $0x8] sm:$0xff]   ;;  %vm172_vm2 = vcmask 15360  }
   0xe   :  { %213 = vmatprep.subr.bf16.mxu1 %v255_v0  ;;  %217 = vmatprep.mubr.msk.bf16.mxu1 %vm256_vm0, %v255_v0  ;;  %v36_v4 = vpack.c.bf16 %v35_v3, %v35_v3  ;;  %v227_v6 = vld [vmem:[%s322_s3] sm:$0xff]  }
   0xf   :  { %206 = vmatpush3.bf16.msra.mxu0 %v224_v1  ;;  %214 = vmatpush3.bf16.msra.mxu1 %v226_v5  ;;  %v190_v7 = vld [vmem:[%s321_s2] ss:$0 sm:$0xff] }
  0x10   :  { %207 = vmatprep.subr.bf16.mxu0 %v255_v0  ;;  %215 = vmatprep.subr.bf16.mxu1 %v255_v0  ;;  %v194_v15 = vld [vmem:[%s323_s4] ss:$0 sm:$0xff] }
  0x13   :  { %208 = vmatpush3.bf16.msra.mxu0 %v225_v2  ;;  %216 = vmatpush3.bf16.msra.mxu1 %v227_v6 }
  0x16   :  { %210 = vmatmul.mubr.msk.bf16.vlgmr.msra.gmra.mxu0 %vm60_vm1, %v36_v4 }
  0xd6   :  { %v98_v8 = vpop.f32.mrf.mxu0 }
  0xd7   :  { %v99_v9 = vadd.f32 %v190_v7, %v98_v8 }
  0xd8   :  { %v211_v10 = vpop.f32.mrf.mxu0 }
  0xd9   :  { %v104_v11 = vmax.f32 %v99_v9, 0.0 }
  0xda   :  { %v101_v12 = vpop.f32.mrf.mxu0 }
  0xdb   :  { %v105_v13 = vpack.c.bf16 %v104_v11, %v104_v11 }
  0xdc   :  { %v212_v14 = vpop.f32.mrf.mxu0 }
  0xdd   :  { %218 = vmatmul.mubr.msk.bf16.vlgmr.msra.gmra.mxu1 %vm60_vm1, %v105_v13 }
 0x19d   :  { %v166_v16 = vpop.f32.mrf.mxu1 }
 0x19e   :  { %v167_v17 = vadd.f32 %v194_v15, %v166_v16 }
 0x19f   :  { %v219_v18 = vpop.f32.mrf.mxu1 }
 0x1a0   :  { %173 = vst.msk [vmem:[%s324_s5] sm:$0xff] %vm172_vm2, %v167_v17  ;;  %v198_v19 = vmul.f32 -1.442695, %v167_v17 }
 0x1a1   :  { %v169_v20 = vpop.f32.mrf.mxu1 }
 0x1a2   :  { %228 = vpow2.f32 %v198_v19 }
 0x1a3   :  { %v220_v21 = vpop.f32.mrf.mxu1 }
 0x1af   :  { %v229_v22 = vpop.eup %228 }
 0x1b0   :  { %v177_v23 = vadd.f32 1.0, %v229_v22 }
 0x1b2   :  { %230 = vrcp.f32 %v177_v23 }
 0x1bf   :  { %v231_v24 = vpop.eup %230 }
 0x1c0   :  { %180 = vst.msk [vmem:[%s325_s6] sm:$0xff] %vm172_vm2, %v231_v24 }
 0x1c1   :  { %189 = vsyncpa [#allocation3], 1 }

</bundles_post_ra>
